<compile_context>
chip_gen: v5e
topology: v5e:2x2
jax: 0.10.0
libtpu: 0.0.40
codegen_flags: <defaults>
</compile_context>

<pallas_src>
import functools

import jax
import jax.numpy as jnp
from jax.experimental import pallas as pl
from jax.experimental.pallas import tpu as pltpu


def _round_up(x, m):
    return (x + m - 1) // m * m


def _qtran_qnet_kernel(packed_ref,
                       w_rep_ref, b_rep_ref,
                       w_qs_ref, w_qa_ref, b_q1_ref,
                       w_out_ref, b_out_ref,
                       state_ref, q_ref, argmax_ref,
                       *, obs_dim, n_agents, n_actions, off_ids, off_avail):
    # Transposed layout: features on sublanes, batch tile (TB) on lanes.
    # Static, 8-aligned sub-views of the packed input slab.
    obs = packed_ref[pl.ds(0, obs_dim), :]               # (obs_dim,   TB) bf16
    ids = packed_ref[pl.ds(off_ids, n_agents), :]        # (n_agents,  TB) bf16
    avail = packed_ref[pl.ds(off_avail, n_actions), :]   # (n_actions, TB) bf16

    # --- representation MLP: state^T = relu(W_rep^T @ obs^T + b_rep^T) ---
    h = jnp.dot(w_rep_ref[...], obs, preferred_element_type=jnp.float32)
    state = jnp.maximum(h + b_rep_ref[...], 0.0)          # (state_dim, TB) f32
    state_ref[...] = state

    # --- Q head layer 1: relu(concat([state, ids]) @ W1 + b1), split matmul ---
    z = (jnp.dot(w_qs_ref[...], state.astype(jnp.bfloat16),
                 preferred_element_type=jnp.float32)
         + jnp.dot(w_qa_ref[...], ids, preferred_element_type=jnp.float32)
         + b_q1_ref[...])
    z = jnp.maximum(z, 0.0)                                # (q_hidden, TB) f32

    # --- Q head output layer ---
    q = jnp.dot(w_out_ref[...], z.astype(jnp.bfloat16),
                preferred_element_type=jnp.float32) + b_out_ref[...]
    q_ref[...] = q                                         # (n_actions, TB) f32

    # --- avail_actions masking + argmax (first-occurrence tie-break) ---
    q_det = jnp.where(avail == 0, jnp.float32(-9999999.0), q)
    row = jax.lax.broadcasted_iota(jnp.int32, q_det.shape, dimension=0)
    max_val = jnp.max(q_det, axis=0, keepdims=True)
    idx = jnp.where(q_det == max_val, row, jnp.int32(q_det.shape[0]))
    argmax_ref[...] = jnp.min(idx, axis=0, keepdims=True)  # (1, TB) int32


def qtran_mixing_qnetwork_forward(observation, agent_ids, params,
                                  avail_actions=None, *, block_b=1024):
    """observation: (batch, n_agents, obs_dim); agent_ids: (batch, n_agents, n_agents).
    Returns (rnn_hidden=None, state, argmax_action, evalQ)."""
    batch, n_agents, obs_dim = observation.shape
    B = batch * n_agents
    state_dim = params["w_rep"].shape[1]
    q_hidden = params["w_out"].shape[0]
    n_actions = params["w_out"].shape[1]

    f32, bf16 = jnp.float32, jnp.bfloat16

    # Batch tile: multiple of 128 lanes, capped so tiny batches aren't over-padded.
    tb = _round_up(min(block_b, _round_up(B, 128)), 128)
    b_pad = _round_up(B, tb)
    num_tiles = b_pad // tb
    pad = b_pad - B

    obs2d = observation.reshape(B, obs_dim).astype(bf16)
    ids2d = agent_ids.reshape(B, n_agents).astype(bf16)
    if avail_actions is None:
        avail2d = jnp.ones((B, n_actions), dtype=bf16)
    else:
        avail2d = avail_actions.reshape(B, n_actions).astype(bf16)

    # Pack all batch-streamed tensors into one (rows_total, b_pad) bf16 slab:
    # one input DMA per grid step.  Each segment starts on an 8-sublane boundary.
    off_ids = _round_up(obs_dim, 8)
    off_avail = _round_up(off_ids + n_agents, 8)
    rows_total = _round_up(off_avail + n_actions, 8)

    def seg(x2d, rows):
        return jnp.pad(x2d.T, ((0, rows - x2d.shape[1]), (0, pad)))

    packed = jnp.concatenate([
        seg(obs2d, off_ids),
        seg(ids2d, off_avail - off_ids),
        seg(avail2d, rows_total - off_avail),
    ], axis=0)                                            # (rows_total, b_pad)

    # Weights transposed for the feat-major layout; bf16 weights, f32 biases.
    w_rep_t = params["w_rep"].T.astype(bf16)              # (state_dim, obs_dim)
    b_rep_t = params["b_rep"].reshape(state_dim, 1).astype(f32)
    w_qs_t = params["w_qs"].T.astype(bf16)                # (q_hidden, state_dim)
    w_qa_t = params["w_qa"].T.astype(bf16)                # (q_hidden, n_agents)
    b_q1_t = params["b_q1"].reshape(q_hidden, 1).astype(f32)
    w_out_t = params["w_out"].T.astype(bf16)              # (n_actions, q_hidden)
    b_out_t = params["b_out"].reshape(n_actions, 1).astype(f32)

    def tile_spec(rows):
        return pl.BlockSpec((rows, tb), lambda i: (0, i))

    def const_spec(shape):
        return pl.BlockSpec(shape, lambda i: (0, 0))

    kernel = functools.partial(
        _qtran_qnet_kernel, obs_dim=obs_dim, n_agents=n_agents,
        n_actions=n_actions, off_ids=off_ids, off_avail=off_avail)

    flops = 2 * b_pad * (obs_dim * state_dim + state_dim * q_hidden
                         + n_agents * q_hidden + q_hidden * n_actions)
    bytes_in = int(packed.size * 2
                   + (w_rep_t.size + w_qs_t.size + w_qa_t.size + w_out_t.size) * 2
                   + (b_rep_t.size + b_q1_t.size + b_out_t.size) * 4)
    bytes_out = int((state_dim + n_actions + 1) * b_pad * 4)

    state_t, q_t, argmax_t = pl.pallas_call(
        kernel,
        out_shape=(
            jax.ShapeDtypeStruct((state_dim, b_pad), f32),   # state^T
            jax.ShapeDtypeStruct((n_actions, b_pad), f32),   # evalQ^T
            jax.ShapeDtypeStruct((1, b_pad), jnp.int32),     # argmax (lane-dense)
        ),
        grid_spec=pltpu.PrefetchScalarGridSpec(
            num_scalar_prefetch=0,
            grid=(num_tiles,),
            in_specs=[
                tile_spec(rows_total),
                const_spec((state_dim, obs_dim)), const_spec((state_dim, 1)),
                const_spec((q_hidden, state_dim)), const_spec((q_hidden, n_agents)),
                const_spec((q_hidden, 1)),
                const_spec((n_actions, q_hidden)), const_spec((n_actions, 1)),
            ],
            out_specs=(tile_spec(state_dim), tile_spec(n_actions), tile_spec(1)),
        ),
        compiler_params=pltpu.CompilerParams(
            dimension_semantics=("parallel",)),
        cost_estimate=pl.CostEstimate(
            flops=flops, transcendentals=0,
            bytes_accessed=bytes_in + bytes_out),
    )(packed, w_rep_t, b_rep_t, w_qs_t, w_qa_t, b_q1_t, w_out_t, b_out_t)

    state = state_t[:, :B].T.reshape(batch, n_agents, state_dim)
    evalQ = q_t[:, :B].T.reshape(batch, n_agents, n_actions)
    argmax_action = argmax_t[0, :B].reshape(batch, n_agents)
    rnn_hidden = None  # use_rnn=False path
    return rnn_hidden, state, argmax_action, evalQ


def init_params(key, obs_dim, state_dim, n_agents, q_hidden, n_actions):
    """Deterministic synthetic parameters (shapes follow the module __init__)."""
    ks = jax.random.split(key, 5)
    scale = 0.1
    w_rep = scale * jax.random.normal(ks[0], (obs_dim, state_dim), jnp.float32)
    b_rep = scale * jax.random.normal(ks[1], (1, state_dim), jnp.float32)
    # BasicQhead first Linear has input dim state_dim + n_agents; split row-wise.
    w_q1 = scale * jax.random.normal(ks[2], (state_dim + n_agents, q_hidden), jnp.float32)
    b_q1 = scale * jax.random.normal(ks[3], (1, q_hidden), jnp.float32)
    w_out = scale * jax.random.normal(ks[4], (q_hidden, n_actions), jnp.float32)
    b_out = jnp.zeros((1, n_actions), jnp.float32)
    return {
        "w_rep": w_rep, "b_rep": b_rep,
        "w_qs": w_q1[:state_dim], "w_qa": w_q1[state_dim:], "b_q1": b_q1,
        "w_out": w_out, "b_out": b_out,
    }


if __name__ == "__main__":
    # TODO(synk): qtran_net / q_tot mixers, target nets and the RNN path are not
    # exercised by this forward(); only representation + eval_Qhead are, matching
    # the PyTorch forward.
    batch, n_agents, obs_dim = 2, 3, 16
    state_dim, q_hidden, n_actions = 32, 32, 5

    key = jax.random.PRNGKey(0)
    k_obs, k_params, k_avail = jax.random.split(key, 3)

    observation = jax.random.normal(k_obs, (batch, n_agents, obs_dim), jnp.float32)
    agent_ids = jnp.tile(jnp.eye(n_agents, dtype=jnp.float32)[None], (batch, 1, 1))
    avail_actions = (jax.random.uniform(k_avail, (batch, n_agents, n_actions)) > 0.2
                     ).astype(jnp.int32)
    # make sure at least one action available per agent
    avail_actions = avail_actions.at[..., 0].set(1)

    params = init_params(k_params, obs_dim, state_dim, n_agents, q_hidden, n_actions)

    rnn_hidden, state, argmax_action, evalQ = qtran_mixing_qnetwork_forward(
        observation, agent_ids, params, avail_actions=avail_actions)
    jax.block_until_ready((state, argmax_action, evalQ))

    # reference check in plain JAX, mirroring the kernel's bf16 matmul inputs
    bf16, f32 = jnp.bfloat16, jnp.float32
    obs_b = observation.reshape(-1, obs_dim).astype(bf16)
    ids_b = agent_ids.reshape(-1, n_agents).astype(bf16)
    st_expect = jnp.maximum(
        jnp.dot(obs_b, params["w_rep"].astype(bf16), preferred_element_type=f32)
        + params["b_rep"], 0.0)
    z_expect = jnp.maximum(
        jnp.dot(st_expect.astype(bf16), params["w_qs"].astype(bf16),
                preferred_element_type=f32)
        + jnp.dot(ids_b, params["w_qa"].astype(bf16), preferred_element_type=f32)
        + params["b_q1"], 0.0)
    q_expect = jnp.dot(z_expect.astype(bf16), params["w_out"].astype(bf16),
                       preferred_element_type=f32) + params["b_out"]
    qd = jnp.where(avail_actions.reshape(-1, n_actions) == 0, -9999999.0, q_expect)
    am_expect = jnp.argmax(qd, axis=-1).astype(jnp.int32)

    assert jnp.allclose(state.reshape(-1, state_dim), st_expect, atol=2e-3), "state mismatch"
    assert jnp.allclose(evalQ.reshape(-1, n_actions), q_expect, atol=2e-3), "evalQ mismatch"
    assert jnp.array_equal(argmax_action.reshape(-1), am_expect), "argmax mismatch"

    print("KERNEL_OK")
</pallas_src>

<mosaic_0001>
module attributes {stable_mosaic.version = 11 : i64} {
  func.func @_qtran_qnet_kernel(%arg0: i32, %arg1: memref<32x128xbf16, #tpu.memory_space<vmem>>, %arg2: memref<32x16xbf16, #tpu.memory_space<vmem>>, %arg3: memref<32x1xf32, #tpu.memory_space<vmem>>, %arg4: memref<32x32xbf16, #tpu.memory_space<vmem>>, %arg5: memref<32x3xbf16, #tpu.memory_space<vmem>>, %arg6: memref<32x1xf32, #tpu.memory_space<vmem>>, %arg7: memref<5x32xbf16, #tpu.memory_space<vmem>>, %arg8: memref<5x1xf32, #tpu.memory_space<vmem>>, %arg9: memref<32x128xf32, #tpu.memory_space<vmem>>, %arg10: memref<5x128xf32, #tpu.memory_space<vmem>>, %arg11: memref<1x128xi32, #tpu.memory_space<vmem>>) attributes {dimension_semantics = [#tpu.dimension_semantics<parallel>], iteration_bounds = array<i64: 1>, scalar_prefetch = 0 : i64, scratch_operands = 0 : i64, tpu.core_type = #tpu.core_type<tc>, window_params = [{transform_indices = @transform_0, window_bounds = array<i64: 32, 128>}, {pipeline_mode = #tpu.pipeline_mode<synchronous>, transform_indices = @transform_1, window_bounds = array<i64: 32, 16>}, {pipeline_mode = #tpu.pipeline_mode<synchronous>, transform_indices = @transform_2, window_bounds = array<i64: 32, 1>}, {pipeline_mode = #tpu.pipeline_mode<synchronous>, transform_indices = @transform_3, window_bounds = array<i64: 32, 32>}, {pipeline_mode = #tpu.pipeline_mode<synchronous>, transform_indices = @transform_4, window_bounds = array<i64: 32, 3>}, {pipeline_mode = #tpu.pipeline_mode<synchronous>, transform_indices = @transform_5, window_bounds = array<i64: 32, 1>}, {pipeline_mode = #tpu.pipeline_mode<synchronous>, transform_indices = @transform_6, window_bounds = array<i64: 5, 32>}, {pipeline_mode = #tpu.pipeline_mode<synchronous>, transform_indices = @transform_7, window_bounds = array<i64: 5, 1>}, {transform_indices = @transform_8, window_bounds = array<i64: 32, 128>}, {transform_indices = @transform_9, window_bounds = array<i64: 5, 128>}, {transform_indices = @transform_10, window_bounds = array<i64: 1, 128>}]} {
    %c0 = arith.constant 0 : index
    %c0_0 = arith.constant 0 : index
    %0 = vector.load %arg1[%c0, %c0_0] : memref<32x128xbf16, #tpu.memory_space<vmem>>, vector<16x128xbf16>
    %c16 = arith.constant 16 : index
    %c0_1 = arith.constant 0 : index
    %1 = vector.load %arg1[%c16, %c0_1] : memref<32x128xbf16, #tpu.memory_space<vmem>>, vector<3x128xbf16>
    %c24 = arith.constant 24 : index
    %c0_2 = arith.constant 0 : index
    %2 = vector.load %arg1[%c24, %c0_2] : memref<32x128xbf16, #tpu.memory_space<vmem>>, vector<5x128xbf16>
    %c0_3 = arith.constant 0 : index
    %c0_4 = arith.constant 0 : index
    %3 = vector.load %arg2[%c0_3, %c0_4] : memref<32x16xbf16, #tpu.memory_space<vmem>>, vector<32x16xbf16>
    %cst = arith.constant dense<0.000000e+00> : vector<32x128xf32>
    %4 = tpu.matmul %3, %0, %cst {dimension_numbers = #tpu.dot_dimension_numbers<[1], [0], [0], [1], [0, 0, 1, 1], [], []>} : vector<32x16xbf16>, vector<16x128xbf16>, vector<32x128xf32> -> vector<32x128xf32>
    %c0_5 = arith.constant 0 : index
    %c0_6 = arith.constant 0 : index
    %5 = vector.load %arg3[%c0_5, %c0_6] : memref<32x1xf32, #tpu.memory_space<vmem>>, vector<32x1xf32>
    %6 = vector.broadcast %5 : vector<32x1xf32> to vector<32x128xf32>
    %7 = arith.addf %4, %6 : vector<32x128xf32>
    %cst_7 = arith.constant 0.000000e+00 : f32
    %8 = vector.broadcast %cst_7 : f32 to vector<32x128xf32>
    %9 = arith.maximumf %7, %8 : vector<32x128xf32>
    %c0_8 = arith.constant 0 : index
    %c0_9 = arith.constant 0 : index
    %10 = vector.load %arg9[%c0_8, %c0_9] : memref<32x128xf32, #tpu.memory_space<vmem>>, vector<32x128xf32>
    tpu.vector_store %arg9[%c0_8, %c0_9], %9 {strides = array<i32>} : memref<32x128xf32, #tpu.memory_space<vmem>>, vector<32x128xf32>,
    %c0_10 = arith.constant 0 : index
    %c0_11 = arith.constant 0 : index
    %11 = vector.load %arg4[%c0_10, %c0_11] : memref<32x32xbf16, #tpu.memory_space<vmem>>, vector<32x32xbf16>
    %12 = arith.truncf %9 : vector<32x128xf32> to vector<32x128xbf16>
    %cst_12 = arith.constant dense<0.000000e+00> : vector<32x128xf32>
    %13 = tpu.matmul %11, %12, %cst_12 {dimension_numbers = #tpu.dot_dimension_numbers<[1], [0], [0], [1], [0, 0, 1, 1], [], []>} : vector<32x32xbf16>, vector<32x128xbf16>, vector<32x128xf32> -> vector<32x128xf32>
    %c0_13 = arith.constant 0 : index
    %c0_14 = arith.constant 0 : index
    %14 = vector.load %arg5[%c0_13, %c0_14] : memref<32x3xbf16, #tpu.memory_space<vmem>>, vector<32x3xbf16>
    %cst_15 = arith.constant dense<0.000000e+00> : vector<32x128xf32>
    %15 = tpu.matmul %14, %1, %cst_15 {dimension_numbers = #tpu.dot_dimension_numbers<[1], [0], [0], [1], [0, 0, 1, 1], [], []>} : vector<32x3xbf16>, vector<3x128xbf16>, vector<32x128xf32> -> vector<32x128xf32>
    %16 = arith.addf %13, %15 : vector<32x128xf32>
    %c0_16 = arith.constant 0 : index
    %c0_17 = arith.constant 0 : index
    %17 = vector.load %arg6[%c0_16, %c0_17] : memref<32x1xf32, #tpu.memory_space<vmem>>, vector<32x1xf32>
    %18 = vector.broadcast %17 : vector<32x1xf32> to vector<32x128xf32>
    %19 = arith.addf %16, %18 : vector<32x128xf32>
    %cst_18 = arith.constant 0.000000e+00 : f32
    %20 = vector.broadcast %cst_18 : f32 to vector<32x128xf32>
    %21 = arith.maximumf %19, %20 : vector<32x128xf32>
    %c0_19 = arith.constant 0 : index
    %c0_20 = arith.constant 0 : index
    %22 = vector.load %arg7[%c0_19, %c0_20] : memref<5x32xbf16, #tpu.memory_space<vmem>>, vector<5x32xbf16>
    %23 = arith.truncf %21 : vector<32x128xf32> to vector<32x128xbf16>
    %cst_21 = arith.constant dense<0.000000e+00> : vector<5x128xf32>
    %24 = tpu.matmul %22, %23, %cst_21 {dimension_numbers = #tpu.dot_dimension_numbers<[1], [0], [0], [1], [0, 0, 1, 1], [], []>} : vector<5x32xbf16>, vector<32x128xbf16>, vector<5x128xf32> -> vector<5x128xf32>
    %c0_22 = arith.constant 0 : index
    %c0_23 = arith.constant 0 : index
    %25 = vector.load %arg8[%c0_22, %c0_23] : memref<5x1xf32, #tpu.memory_space<vmem>>, vector<5x1xf32>
    %26 = vector.broadcast %25 : vector<5x1xf32> to vector<5x128xf32>
    %27 = arith.addf %24, %26 : vector<5x128xf32>
    %c0_24 = arith.constant 0 : index
    %c0_25 = arith.constant 0 : index
    %28 = vector.load %arg10[%c0_24, %c0_25] : memref<5x128xf32, #tpu.memory_space<vmem>>, vector<5x128xf32>
    tpu.vector_store %arg10[%c0_24, %c0_25], %27 {strides = array<i32>} : memref<5x128xf32, #tpu.memory_space<vmem>>, vector<5x128xf32>,
    %cst_26 = arith.constant 0.000000e+00 : bf16
    %29 = vector.broadcast %cst_26 : bf16 to vector<5x128xbf16>
    %30 = arith.cmpf oeq, %2, %29 : vector<5x128xbf16>
    %cst_27 = arith.constant 0xCB18967F : f32
    %31 = vector.broadcast %cst_27 : f32 to vector<5x128xf32>
    %32 = arith.select %30, %31, %27 : vector<5x128xi1>, vector<5x128xf32>
    %33 = tpu.iota {dimensions = array<i32: 0>} : vector<5x128xi32>
    %cst_28 = arith.constant dense<0xFF800000> : vector<128xf32>
    %34 = vector.multi_reduction <maximumf>, %32, %cst_28 [0] : vector<5x128xf32> to vector<128xf32>
    %35 = vector.shape_cast %34 : vector<128xf32> to vector<1x128xf32>
    %36 = vector.broadcast %35 : vector<1x128xf32> to vector<5x128xf32>
    %37 = arith.cmpf oeq, %32, %36 : vector<5x128xf32>
    %c5_i32 = arith.constant 5 : i32
    %38 = vector.broadcast %c5_i32 : i32 to vector<5x128xi32>
    %39 = arith.select %37, %33, %38 : vector<5x128xi1>, vector<5x128xi32>
    %cst_29 = arith.constant dense<2147483647> : vector<128xi32>
    %40 = vector.multi_reduction <minsi>, %39, %cst_29 [0] : vector<5x128xi32> to vector<128xi32>
    %41 = vector.shape_cast %40 : vector<128xi32> to vector<1x128xi32>
    %c0_30 = arith.constant 0 : index
    %c0_31 = arith.constant 0 : index
    %42 = vector.load %arg11[%c0_30, %c0_31] : memref<1x128xi32, #tpu.memory_space<vmem>>, vector<1x128xi32>
    tpu.vector_store %arg11[%c0_30, %c0_31], %41 {strides = array<i32>} : memref<1x128xi32, #tpu.memory_space<vmem>>, vector<1x128xi32>,
    return
  }
  func.func @transform_0(%arg0: i32) -> (i32, i32) {
    %c0_i32 = arith.constant 0 : i32
    %c0_i32_0 = arith.constant 0 : i32
    return %c0_i32, %arg0 : i32, i32
  }
  func.func @transform_1(%arg0: i32) -> (i32, i32) {
    %c0_i32 = arith.constant 0 : i32
    %c0_i32_0 = arith.constant 0 : i32
    %c0_i32_1 = arith.constant 0 : i32
    return %c0_i32, %c0_i32_0 : i32, i32
  }
  func.func @transform_2(%arg0: i32) -> (i32, i32) {
    %c0_i32 = arith.constant 0 : i32
    %c0_i32_0 = arith.constant 0 : i32
    %c0_i32_1 = arith.constant 0 : i32
    return %c0_i32, %c0_i32_0 : i32, i32
  }
  func.func @transform_3(%arg0: i32) -> (i32, i32) {
    %c0_i32 = arith.constant 0 : i32
    %c0_i32_0 = arith.constant 0 : i32
    %c0_i32_1 = arith.constant 0 : i32
    return %c0_i32, %c0_i32_0 : i32, i32
  }
  func.func @transform_4(%arg0: i32) -> (i32, i32) {
    %c0_i32 = arith.constant 0 : i32
    %c0_i32_0 = arith.constant 0 : i32
    %c0_i32_1 = arith.constant 0 : i32
    return %c0_i32, %c0_i32_0 : i32, i32
  }
  func.func @transform_5(%arg0: i32) -> (i32, i32) {
    %c0_i32 = arith.constant 0 : i32
    %c0_i32_0 = arith.constant 0 : i32
    %c0_i32_1 = arith.constant 0 : i32
    return %c0_i32, %c0_i32_0 : i32, i32
  }
  func.func @transform_6(%arg0: i32) -> (i32, i32) {
    %c0_i32 = arith.constant 0 : i32
    %c0_i32_0 = arith.constant 0 : i32
    %c0_i32_1 = arith.constant 0 : i32
    return %c0_i32, %c0_i32_0 : i32, i32
  }
  func.func @transform_7(%arg0: i32) -> (i32, i32) {
    %c0_i32 = arith.constant 0 : i32
    %c0_i32_0 = arith.constant 0 : i32
    %c0_i32_1 = arith.constant 0 : i32
    return %c0_i32, %c0_i32_0 : i32, i32
  }
  func.func @transform_8(%arg0: i32) -> (i32, i32) {
    %c0_i32 = arith.constant 0 : i32
    %c0_i32_0 = arith.constant 0 : i32
    return %c0_i32, %arg0 : i32, i32
  }
  func.func @transform_9(%arg0: i32) -> (i32, i32) {
    %c0_i32 = arith.constant 0 : i32
    %c0_i32_0 = arith.constant 0 : i32
    return %c0_i32, %arg0 : i32, i32
  }
  func.func @transform_10(%arg0: i32) -> (i32, i32) {
    %c0_i32 = arith.constant 0 : i32
    %c0_i32_0 = arith.constant 0 : i32
    return %c0_i32, %arg0 : i32, i32
  }
}

</mosaic_0001>

<bundles_post_ra>
// kernel: tpu_custom_call.1
= control target key start
LH: loop header
LB: loop body
LE: loop exit
PB: predicated region body
PF: predicated region fallthrough
CT: control target
= control target key end

     0   :  { %16 = vsyncpa [#allocation3], 0  ;;  %v467_v3 = vmov 0   ;;  %vm83_vm0 = vcmask 130048   ;;  %s600_s0 = inlined_call_operand.vmem [shape: bf16[32,128], index: 0, kind: input, shape index: {}]   ;;  %s601_s1 = inlined_call_operand.vmem [shape: bf16[32,16], index: 1, kind: input, shape index: {}]   ;;  %s602_s2 = inlined_call_operand.vmem [shape: f32[32,1], index: 2, kind: input, shape index: {}]   ;;  %s603_s3 = inlined_call_operand.vmem [shape: bf16[32,32], index: 3, kind: input, shape index: {}]   ;;  %s604_s4 = inlined_call_operand.vmem [shape: bf16[32,3], index: 4, kind: input, shape index: {}]   ;;  %s605_s5 = inlined_call_operand.vmem [shape: f32[32,1], index: 5, kind: input, shape index: {}]   ;;  %s606_s6 = inlined_call_operand.vmem [shape: bf16[5,32], index: 6, kind: input, shape index: {}]   ;;  %s607_s7 = inlined_call_operand.vmem [shape: f32[5,1], index: 7, kind: input, shape index: {}]   ;;  %s608_s8 = inlined_call_operand.hbm [shape: f32[32,128], index: 8, kind: output, shape index: {0}]   ;;  %s609_s9 = inlined_call_operand.hbm [shape: f32[5,128], index: 9, kind: output, shape index: {1}]   ;;  %s610_s10 = inlined_call_operand.hbm [shape: s32[1,128], index: 10, kind: output, shape index: {2}]  }
   0x1   :  { %v374_v0 = vld [vmem:[%s600_s0] sm:$0xff]  ;;  %v45_v1 = vld [vmem:[%s602_s2 + $0x10] sm:$0xff]  ;;  %389 = vset.pattern.permute.xlu1 %v467_v3  ;;  %388 = vset.pattern.permute.xlu0 %v467_v3 }
   0x2   :  { %v375_v2 = vld [vmem:[%s601_s1] sm:$0xff]  ;;  %97 = vmatpush.bf16.msra.mxu0 %v374_v0  ;;  %59 = vperm.xlu0 %388, %v45_v1  }
   0x3   :  { %v43_v4 = vld [vmem:[%s602_s2] sm:$0xff]  ;;  %390 = vset.pattern.permute.xlu2 %v467_v3 }
   0x4   :  { %49 = vperm.xlu1 %389, %v43_v4  }
   0x5   :  { %17 = vsyncpa [#allocation5], 0  ;;  %351 = vmatmul.msk.bf16.vlgmr.msra.gmra.mxu0 %vm83_vm0, %v375_v2  ;;  %v46_v5 = vld [vmem:[%s602_s2 + $0x18] sm:$0xff]  ;;  %v44_v6 = vld [vmem:[%s602_s2 + $0x8] sm:$0xff]  ;;  %vm144_vm1 = vcmask 1040384   ;;  %vm145_vm2 = vcmask 1041408  }
   0x6   :  { %v206_v7 = vld [vmem:[%s605_s5] sm:$0xff]  ;;  %v207_v8 = vld [vmem:[%s605_s5 + $0x8] sm:$0xff]  ;;  %v468_v11 = vmov 65535   ;;  %vm137_vm3 = vcmask 23552   ;;  %v208_v29 = vld [vmem:[%s605_s5 + $0x10] sm:$0xff]  ;;  %vm180_vm4 = vcmask 261120  }
   0x7   :  { %v376_v9 = vld [vmem:[%s601_s1 + $0x8] sm:$0xff]  ;;  %v146_v12 = vsel %vm144_vm1, 4294967295, %v468_v11  ;;  %v379_v18 = vld [vmem:[%s604_s4] sm:$0xff]  ;;  %222 = vperm.xlu2 %390, %v208_v29   ;;  %v209_v34 = vld [vmem:[%s605_s5 + $0x18] sm:$0xff]  ;;  %s469_s23 = smov [#allocation2]   ;;  %s296_s27 = sshll.u32 %s608_s8, 4  ;;  %s297_s27 = int_to_ptr.hbm [resolvable:$true] %s296_s27 }
   0x8   :  { %v37_v13 = vld [vmem:[%s600_s0 + $0x8] sm:$0x3]  ;;  %v147_v14 = vsel %vm145_vm2, %v146_v12, 0  ;;  %v377_v37 = vld [vmem:[%s603_s3] sm:$0xff]  ;;  %s294_s24 = sshll.u32 %s469_s23, 4  ;;  %s470_s28 = smov 128   ;;  %s295_s24 = int_to_ptr.vmem [resolvable:$true] %s294_s24 }
   0x9   :  { %v149_v15 = vand.u32 %v147_v14, %v37_v13  ;;  %v380_v26 = vld [vmem:[%s604_s4 + $0x8] sm:$0xff]  ;;  %v241_v38 = vld [vmem:[%s607_s7] sm:$0x1f]  ;;  %s471_s29 = smov 8   ;;  %s472_s11 = smov [#allocation4]   ;;  %vm269_vm6 = vcmask 1044480   ;;  %v267_v14 = vlaneseq }
   0xa   :  { %64 = vperm.xlu0 %388, %v46_v5   ;;  %v378_v39 = vld [vmem:[%s603_s3 + $0x8] sm:$0xff]  ;;  %v238_v2 = vld [vmem:[%s606_s6] sm:$0x7]  ;;  %s308_s6 = sshll.u32 %s472_s11, 4  ;;  %s310_s1 = sshll.u32 %s609_s9, 4  ;;  %s309_s6 = int_to_ptr.vmem [resolvable:$true] %s308_s6  ;;  %s311_s1 = int_to_ptr.hbm [resolvable:$true] %s310_s1 }
   0xb   :  { %158 = vmatpush.bf16.msra.mxu1 %v149_v15  ;;  %v38_v3 = vld [vmem:[%s600_s0 + $0xc] sm:$0x7]  ;;  %s473_s0 = smov [#allocation6]   ;;  %s321_s15 = sshll.u32 %s610_s10, 4  ;;  %s322_s15 = int_to_ptr.hbm [resolvable:$true] %s321_s15 }
   0xc   :  { %54 = vperm.xlu1 %389, %v44_v6   ;;  %v264_v4 = vunpack.c.l.bf16 %v38_v3  ;;  %s319_s8 = sshll.u32 %s473_s0, 4  ;;  %s320_s8 = int_to_ptr.vmem [resolvable:$true] %s319_s8 }
   0xe   :  { %361 = vmatmul.msk.bf16.vlgmr.msra.gmra.mxu1 %vm137_vm3, %v379_v18  ;;  %vm265_vm5 = vcmp.eq.f32.partialorder %v264_v4, 0.0 }
   0xf   :  { %227 = vperm.xlu2 %390, %v209_v34  }
  0x12   :  { %212 = vperm.xlu0 %388, %v206_v7  }
  0x14   :  { %217 = vperm.xlu1 %389, %v207_v8  }
  0x15   :  { %352 = vmatmul.msk.bf16.gmra.mxu0 %vm83_vm0, %v376_v9 }
  0x17   :  { %244 = vperm.xlu2 %390, %v241_v38  }
  0x1e   :  { %362 = vmatmul.msk.bf16.gmra.mxu1 %vm137_vm3, %v380_v26 }
  0x61   :  { %v223_v45 = vpop.permute.xlu2 %222 }
  0x69   :  { %v228_v55 = vpop.permute.xlu2 %227 }
  0x71   :  { %v245_v5 = vpop.permute.xlu2 %244 }
  0x74   :  { %v60_v24 = vpop.permute.xlu0 %59 }
  0x76   :  { %v50_v10 = vpop.permute.xlu1 %49 }
  0x7c   :  { %v65_v30 = vpop.permute.xlu0 %64 }
  0x7e   :  { %v55_v20 = vpop.permute.xlu1 %54 }
  0x82   :  { %v99_v16 = vpop.f32.mrf.mxu0 }
  0x83   :  { %v100_v17 = vadd.f32 %v99_v16, %v50_v10 }
  0x84   :  { %v213_v58 = vpop.permute.xlu0 %212 }
  0x85   :  { %v109_v19 = vmax.f32 %v100_v17, 0.0  ;;  %v268_v17 = vshrl.u32 %v267_v14, 7 }
  0x86   :  { %v218_v54 = vpop.permute.xlu1 %217 }
  0x87   :  { %113 = vst [vmem:[#allocation2] sm:$0xff] %v109_v19 }
  0x8a   :  { %v101_v21 = vpop.f32.mrf.mxu0 }
  0x8b   :  { %v102_v22 = vadd.f32 %v101_v21, %v55_v20  ;;  %v160_v40 = vpop.f32.mrf.mxu1 }
  0x8d   :  { %v110_v23 = vmax.f32 %v102_v22, 0.0 }
  0x8f   :  { %114 = vst [vmem:[#allocation2 + $0x8] sm:$0xff] %v110_v23  ;;  %v121_v36 = vpack.c.bf16 %v110_v23, %v109_v19 }
  0x92   :  { %v104_v25 = vpop.f32.mrf.mxu0 }
  0x93   :  { %v105_v27 = vadd.f32 %v104_v25, %v60_v24  ;;  %v162_v42 = vpop.f32.mrf.mxu1 }
  0x95   :  { %v111_v28 = vmax.f32 %v105_v27, 0.0 }
  0x97   :  { %115 = vst [vmem:[#allocation2 + $0x10] sm:$0xff] %v111_v28 }
  0x9a   :  { %v106_v31 = vpop.f32.mrf.mxu0 }
  0x9b   :  { %v107_v32 = vadd.f32 %v106_v31, %v65_v30  ;;  %v165_v44 = vpop.f32.mrf.mxu1 }
  0x9d   :  { %v112_v33 = vmax.f32 %v107_v32, 0.0 }
  0x9f   :  { %116 = vst [vmem:[#allocation2 + $0x18] sm:$0xff] %v112_v33  ;;  %v122_v35 = vpack.c.bf16 %v112_v33, %v111_v28 }
  0xa0   :  { %302 = dma.vmem_to_hbm [thread:$0]  %s295_s24, 512, %s297_s27, [#allocation3], %s470_s28, %s470_s28, %s471_s29  }
  0xa1   :  { %193 = vmatpush.bf16.msra.mxu2 %v122_v35 }
  0xa3   :  { %v167_v49 = vpop.f32.mrf.mxu1 }
  0xa5   :  { %194 = vmatpush.bf16.msra.mxu2 %v121_v36 }
  0xa8   :  { %371 = vmatmul.msk.bf16.vlgmr.msra.gmra.mxu2 %vm180_vm4, %v377_v37 }
  0xb8   :  { %372 = vmatmul.msk.bf16.gmra.mxu2 %vm180_vm4, %v378_v39 }
 0x12b   :  { %v196_v41 = vpop.f32.mrf.mxu2 }
 0x12c   :  { %v197_v51 = vadd.f32 %v196_v41, %v160_v40 }
 0x12e   :  { %v230_v59 = vadd.f32 %v213_v58, %v197_v51 }
 0x130   :  { %v234_v0 = vmax.f32 %v230_v59, 0.0 }
 0x133   :  { %v198_v43 = vpop.f32.mrf.mxu2 }
 0x134   :  { %v199_v48 = vadd.f32 %v198_v43, %v162_v42 }
 0x136   :  { %v231_v56 = vadd.f32 %v218_v54, %v199_v48 }
 0x138   :  { %v235_v62 = vmax.f32 %v231_v56, 0.0 }
 0x13a   :  { %v239_v1 = vpack.c.bf16 %v235_v62, %v234_v0 }
 0x13b   :  { %v201_v46 = vpop.f32.mrf.mxu2 }
 0x13c   :  { %v202_v47 = vadd.f32 %v201_v46, %v165_v44 }
 0x13e   :  { %v232_v53 = vadd.f32 %v223_v45, %v202_v47 }
 0x140   :  { %v236_v60 = vmax.f32 %v232_v53, 0.0 }
 0x143   :  { %v203_v50 = vpop.f32.mrf.mxu2 }
 0x144   :  { %v204_v52 = vadd.f32 %v203_v50, %v167_v49 }
 0x146   :  { %v233_v57 = vadd.f32 %v228_v55, %v204_v52 }
 0x148   :  { %v237_v61 = vmax.f32 %v233_v57, 0.0 }
 0x14a   :  { %v240_v63 = vpack.c.bf16 %v237_v61, %v236_v60 }
 0x14c   :  { %256 = vmatpush.bf16.msra.mxu3 %v240_v63 }
 0x150   :  { %257 = vmatpush.bf16.msra.mxu3 %v239_v1 }
 0x153   :  { %373 = vmatmul.msk.bf16.vlgmr.msra.gmra.mxu3 %vm180_vm4, %v238_v2 }
 0x1d6   :  { %v259_v6 = vpop.f32.mrf.mxu3 }
 0x1d7   :  { %v260_v7 = vadd.f32 %v259_v6, %v245_v5 }
 0x1d9   :  { %263 = vst [vmem:[#allocation4] sm:$0x1f] %v260_v7  ;;  %v266_v8 = vsel %vm265_vm5, -9999999.0, %v260_v7 }
 0x1da   :  { %v270_v9 = vsel %vm269_vm6, %v266_v8, -inf  ;;  %313 = dma.vmem_to_hbm [thread:$0]  %s309_s6, 128, %s311_s1, [#allocation5]  }
 0x1db   :  { %v271_v10 = vrot.slane %v270_v9, 4 }
 0x1dd   :  { %v272_v11 = vmax.f32 %v270_v9, %v271_v10 }
 0x1de   :  { %v261_v12 = vpop.f32.mrf.mxu3 }
 0x1df   :  { %v273_v13 = vrot.slane %v272_v11, 2 }
 0x1e1   :  { %v274_v15 = vmax.f32 %v272_v11, %v273_v13 }
 0x1e3   :  { %v275_v16 = vrot.slane %v274_v15, 1 }
 0x1e5   :  { %v276_v18 = vmax.f32 %v274_v15, %v275_v16 }
 0x1e7   :  { %vm277_vm7 = vcmp.eq.f32.partialorder %v266_v8, %v276_v18 }
 0x1e8   :  { %v278_v19 = vsel %vm277_vm7, %v268_v17, 5 }
 0x1e9   :  { %v279_v20 = vsel %vm269_vm6, %v278_v19, 2147483647 }
 0x1ea   :  { %v280_v21 = vrot.slane %v279_v20, 4 }
 0x1ec   :  { %vm281_vm8 = vcmp.lt.s32.totalorder %v279_v20, %v280_v21 }
 0x1ed   :  { %v282_v22 = vsel %vm281_vm8, %v279_v20, %v280_v21 }
 0x1ee   :  { %v283_v23 = vrot.slane %v282_v22, 2 }
 0x1f0   :  { %vm284_vm9 = vcmp.lt.s32.totalorder %v282_v22, %v283_v23 }
 0x1f1   :  { %v285_v24 = vsel %vm284_vm9, %v282_v22, %v283_v23 }
 0x1f2   :  { %v286_v25 = vrot.slane %v285_v24, 1 }
 0x1f4   :  { %vm287_vm10 = vcmp.lt.s32.totalorder %v285_v24, %v286_v25 }
 0x1f5   :  { %v288_v26 = vsel %vm287_vm10, %v285_v24, %v286_v25 }
 0x1f6   :  { %289 = vst [vmem:[#allocation6] sm:$0x1] %v288_v26 }
 0x1f7   :  { %324 = dma.vmem_to_hbm [thread:$0]  %s320_s8, 16, %s322_s15, [#allocation5]  }
 0x1f8   :  { %463 = dma.done.wait [#allocation3], 512  }
 0x1f9   :  { %464 = vsyncadd [#allocation3], 4294966784 }
 0x1fa   :  { %465 = dma.done.wait [#allocation5], 144  }
 0x1fb   :  { %466 = vsyncadd [#allocation5], 4294967152 }
 0x1fc   :  { %337 = vsyncpa [#allocation3], 1 }
 0x1fd   :  { %338 = vsyncpa [#allocation5], 1 }

</bundles_post_ra>
